<compile_context>
chip_gen: v7x
topology: tpu7x:2x2x1
jax: 0.10.0
libtpu: 0.0.40
codegen_flags: <defaults>
</compile_context>

<pallas_src>
import numpy as np
import jax
import jax.numpy as jnp
from jax import lax
from jax.experimental import pallas as pl
from jax.experimental.pallas import tpu as pltpu


_FILTERS = {
    1: [1.0],
    2: [1.0, 1.0],
    3: [1.0, 2.0, 1.0],
    4: [1.0, 3.0, 3.0, 1.0],
    5: [1.0, 4.0, 6.0, 4.0, 1.0],
    6: [1.0, 5.0, 10.0, 10.0, 5.0, 1.0],
    7: [1.0, 6.0, 15.0, 20.0, 15.0, 6.0, 1.0],
}

# Below this many pixels per slice, fold both contractions into one matrix.
_KRON_MAX_ELEMS = 48 * 48


def _get_filter_1d(filt_size=3):
    a = np.array(_FILTERS[filt_size], dtype=np.float64)
    return a / a.sum()  # 1-D factor; 2-D blur filter = outer(a, a)


def _pad_gather_matrix(size, p0, p1, pad_type):
    """(size+p0+p1, size) matrix P such that x_padded = P @ x along one axis."""
    q = np.arange(size + p0 + p1)
    r = q - p0
    if pad_type in ("reflect", "refl"):
        # Matches ReflectionPad2d's constraint: pad must be < dim.
        assert p0 < size and p1 < size, (
            f"reflect pad ({p0},{p1}) must be smaller than dim {size}")
        r = np.abs(r)
        r = np.where(r >= size, 2 * (size - 1) - r, r)
        valid = np.ones_like(r, dtype=bool)
    elif pad_type in ("replicate", "repl"):
        r = np.clip(r, 0, size - 1)
        valid = np.ones_like(r, dtype=bool)
    elif pad_type == "zero":
        valid = (r >= 0) & (r < size)
        r = np.clip(r, 0, size - 1)
    else:
        raise ValueError(f"pad type [{pad_type}] not recognized")
    P = np.zeros((size + p0 + p1, size), dtype=np.float64)
    P[q[valid], r[valid]] = 1.0
    return P


def _build_folded_matrices(H, W, filt_size, stride, p0, p1, pad_type):
    """Ah:(H_out,H), Aw:(W,W_out) float64, padding folded in (out = Ah @ x @ Aw)."""
    a = _get_filter_1d(filt_size)
    H_pad, W_pad = H + p0 + p1, W + p0 + p1
    H_out = (H_pad - filt_size) // stride + 1
    W_out = (W_pad - filt_size) // stride + 1

    Ah_full = np.zeros((H_out, H_pad), dtype=np.float64)
    for i in range(H_out):
        Ah_full[i, stride * i: stride * i + filt_size] = a
    Aw_full = np.zeros((W_pad, W_out), dtype=np.float64)
    for j in range(W_out):
        Aw_full[stride * j: stride * j + filt_size, j] = a

    Ph = _pad_gather_matrix(H, p0, p1, pad_type)   # (H_pad, H)
    Pw = _pad_gather_matrix(W, p0, p1, pad_type)   # (W_pad, W)
    Ah = Ah_full @ Ph                              # (H_out, H)
    Aw = Pw.T @ Aw_full                            # (W, W_out)
    return Ah, Aw, H_out, W_out


def _vmem_limit_bytes():
    """Generation-aware scoped-VMEM limit (v7x has 64 MiB physical)."""
    try:
        cap = int(pltpu.get_tpu_info().vmem_capacity_bytes)
    except Exception:
        cap = 128 * 1024 * 1024
    return int(min(max(cap // 2, 32 * 1024 * 1024), 64 * 1024 * 1024))


def _pick_block_rows(nc, bytes_per_row, target_bytes):
    """Rows (channel slices) per grid step.

    Whole problem in one block if it fits the budget (single-TC chips: no
    point splitting); otherwise a multiple of 8 (sublane constraint on the
    2-D kron block) sized from the byte budget, biased toward an even grid
    length so both v7x TensorCores get equal work.
    """
    if nc * bytes_per_row <= target_bytes:
        return nc
    b = max(8, (target_bytes // max(bytes_per_row, 1)) // 8 * 8)
    b = min(b, nc)
    g = -(-nc // b)
    if g > 1 and (g % 2) == 1:
        b2 = min(nc, max(8, ((-(-nc // (g + 1))) + 7) // 8 * 8))
        if (-(-nc // b2)) % 2 == 0:
            b = b2
    return b


# --------------------------------------------------------------------------
# Kernels
# --------------------------------------------------------------------------

def _kron_kernel(k_ref, x_ref, o_ref):
    # x_ref: (B, H*W) native dtype, k_ref: (H*W, Ho*Wo) native dtype,
    # o_ref: (B, Ho*Wo).  One large-M MXU matmul, f32 accumulation.
    o_ref[...] = jnp.dot(
        x_ref[...], k_ref[...], preferred_element_type=jnp.float32
    ).astype(o_ref.dtype)


def _separable_kernel(ah_ref, aw_ref, x_ref, o_ref):
    # ah_ref: (H_out, H) f32, aw_ref: (W, W_out) x.dtype,
    # x_ref: (B, H, W) x.dtype, o_ref: (B, H_out, W_out).
    B, H, W = x_ref.shape
    _, H_out, W_out = o_ref.shape

    if H % 8 == 0:
        # W contraction as one big-M 2-D matmul (RHS resident in MXU weight
        # regs); (B,H,W)->(B*H,W) is a layout-free view when H % 8 == 0.
        t3 = jnp.dot(
            x_ref[...].reshape(B * H, W), aw_ref[...],
            preferred_element_type=jnp.float32,
        ).reshape(B, H, W_out)
    else:
        aw_b = jnp.broadcast_to(aw_ref[...][None], (B, W, W_out))
        t3 = jnp.einsum("bhw,bwp->bhp", x_ref[...], aw_b,
                        preferred_element_type=jnp.float32)

    # H contraction (batched MXU matmul, f32 accumulation).
    ah_b = jnp.broadcast_to(ah_ref[...][None], (B, H_out, H))
    out = jnp.einsum("boh,bhp->bop", ah_b, t3,
                     preferred_element_type=jnp.float32)
    o_ref[...] = out.astype(o_ref.dtype)


# --------------------------------------------------------------------------
# Wrapper
# --------------------------------------------------------------------------

def downsample(x, filt_size=3, stride=2, pad_type="reflect", pad_off=0):
    """x: (N, C, H, W) -> (N, C, H_out, W_out); matches PyTorch Downsample.forward."""
    N, C, H, W = x.shape
    p0 = int(1.0 * (filt_size - 1) / 2) + pad_off
    p1 = int(np.ceil(1.0 * (filt_size - 1) / 2)) + pad_off

    if filt_size == 1:
        if pad_off == 0:
            return x[:, :, ::stride, ::stride]
        mode = {"reflect": "reflect", "refl": "reflect", "replicate": "edge",
                "repl": "edge", "zero": "constant"}[pad_type]
        xp = jnp.pad(x, ((0, 0), (0, 0), (p0, p1), (p0, p1)), mode=mode)
        return xp[:, :, ::stride, ::stride]

    Ah64, Aw64, H_out, W_out = _build_folded_matrices(
        H, W, filt_size, stride, p0, p1, pad_type)

    NC = N * C
    elt = x.dtype.itemsize
    vmem_limit = _vmem_limit_bytes()
    target_bytes = min(8 * 1024 * 1024, vmem_limit // 8)
    cparams = pltpu.CompilerParams(
        dimension_semantics=("parallel",), vmem_limit_bytes=vmem_limit)

    if H * W <= _KRON_MAX_ELEMS:
        # ------ small-map path: one folded matrix, lane-dense 2-D blocks ----
        K = np.einsum("oh,wp->hwop", Ah64, Aw64).reshape(H * W, H_out * W_out)
        Kd = jnp.asarray(K, dtype=x.dtype)   # blur coeffs are exact in bf16
        x2 = x.reshape(NC, H * W)            # free contiguous view
        row_bytes = (H * W + H_out * W_out) * elt
        B = _pick_block_rows(NC, row_bytes, target_bytes)
        grid = (pl.cdiv(NC, B),)
        cost = pl.CostEstimate(
            flops=int(2 * NC * H * W * H_out * W_out),
            transcendentals=0,
            bytes_accessed=int(NC * row_bytes + K.size * elt))
        out2 = pl.pallas_call(
            _kron_kernel,
            out_shape=jax.ShapeDtypeStruct((NC, H_out * W_out), x.dtype),
            grid_spec=pltpu.PrefetchScalarGridSpec(
                num_scalar_prefetch=0,
                grid=grid,
                in_specs=[
                    pl.BlockSpec((H * W, H_out * W_out), lambda i: (0, 0)),
                    pl.BlockSpec((B, H * W), lambda i: (i, 0)),
                ],
                out_specs=pl.BlockSpec((B, H_out * W_out), lambda i: (i, 0)),
            ),
            compiler_params=cparams,
            cost_estimate=cost,
        )(Kd, x2)
        return out2.reshape(N, C, H_out, W_out)

    # ------ large-map path: separable Ah @ x @ Aw, native-dtype input -------
    # TODO(synk): row-tile H_out as a 2nd ("arbitrary") grid axis for images
    # whose single slice exceeds the VMEM budget, and add a 3-tap VPU path for
    # very large f32 maps on v5e.
    Ah = jnp.asarray(Ah64, dtype=jnp.float32)   # used against f32 intermediate
    Aw = jnp.asarray(Aw64, dtype=x.dtype)       # native-dtype MXU operand
    x3 = x.reshape(NC, H, W)                    # free contiguous view
    row_bytes = (H * W * elt + H * W_out * 4 + H_out * H * 4
                 + H_out * W_out * elt)
    B = max(1, min(NC, target_bytes // max(row_bytes, 1)))
    grid = (pl.cdiv(NC, B),)
    cost = pl.CostEstimate(
        flops=int(2 * NC * H * W * W_out + 2 * NC * H_out * H * W_out),
        transcendentals=0,
        bytes_accessed=int(NC * (H * W + H_out * W_out) * elt
                           + Ah64.size * 4 + Aw64.size * elt))
    out3 = pl.pallas_call(
        _separable_kernel,
        out_shape=jax.ShapeDtypeStruct((NC, H_out, W_out), x.dtype),
        grid_spec=pltpu.PrefetchScalarGridSpec(
            num_scalar_prefetch=0,
            grid=grid,
            in_specs=[
                pl.BlockSpec((H_out, H), lambda i: (0, 0)),        # Ah (constant)
                pl.BlockSpec((W, W_out), lambda i: (0, 0)),        # Aw (constant)
                pl.BlockSpec((B, H, W), lambda i: (i, 0, 0)),      # input block
            ],
            out_specs=pl.BlockSpec((B, H_out, W_out), lambda i: (i, 0, 0)),
        ),
        compiler_params=cparams,
        cost_estimate=cost,
    )(Ah, Aw, x3)
    return out3.reshape(N, C, H_out, W_out)


# --------------------------------------------------------------------------
# Pure-JAX reference (pad + depthwise conv, matching F.conv2d(groups=C))
# --------------------------------------------------------------------------

def _reference_downsample(x, filt_size=3, stride=2, pad_type="reflect", pad_off=0):
    N, C, H, W = x.shape
    p0 = int(1.0 * (filt_size - 1) / 2) + pad_off
    p1 = int(np.ceil(1.0 * (filt_size - 1) / 2)) + pad_off
    mode = {"reflect": "reflect", "refl": "reflect", "replicate": "edge",
            "repl": "edge", "zero": "constant"}[pad_type]
    xp = jnp.pad(x.astype(jnp.float32),
                 ((0, 0), (0, 0), (p0, p1), (p0, p1)), mode=mode)
    a = _get_filter_1d(filt_size)
    filt2d = np.outer(a, a).astype(np.float32)       # already sums to 1
    w = jnp.asarray(np.tile(filt2d[None, None], (C, 1, 1, 1)))  # (C,1,k,k)
    return lax.conv_general_dilated(
        xp, w, window_strides=(stride, stride), padding="VALID",
        dimension_numbers=("NCHW", "OIHW", "NCHW"), feature_group_count=C)


if __name__ == "__main__":
    key = jax.random.PRNGKey(0)
    N, C, H, W = 2, 4, 16, 16
    x = jax.random.normal(key, (N, C, H, W), dtype=jnp.float32)

    # Default blur-pool configuration (reflect pad, filt_size=3, stride=2).
    out = jax.block_until_ready(downsample(x, 3, 2, "reflect"))
    ref = jax.block_until_ready(_reference_downsample(x, 3, 2, "reflect", 0))
    assert out.shape == (N, C, 8, 8), out.shape
    np.testing.assert_allclose(np.asarray(out), np.asarray(ref),
                               rtol=1e-5, atol=1e-5)

    # Other pad modes and pad_off>0 (folded-pad construction, kron path).
    for pt, po in (("replicate", 0), ("zero", 0), ("reflect", 1)):
        o = jax.block_until_ready(downsample(x, 3, 2, pt, po))
        r = jax.block_until_ready(_reference_downsample(x, 3, 2, pt, po))
        np.testing.assert_allclose(np.asarray(o), np.asarray(r),
                                   rtol=1e-5, atol=1e-5)

    # bf16 input exercises the native-dtype (no f32 up-cast) MXU path.
    xb = x.astype(jnp.bfloat16)
    ob = jax.block_until_ready(downsample(xb, 3, 2, "reflect"))
    rb = jax.block_until_ready(_reference_downsample(xb, 3, 2, "reflect", 0))
    np.testing.assert_allclose(np.asarray(ob, dtype=np.float32),
                               np.asarray(rb, dtype=np.float32),
                               rtol=5e-2, atol=5e-2)

    # Larger feature map exercises the separable (non-kron) path.
    x2 = jax.random.normal(jax.random.PRNGKey(1), (1, 2, 64, 64),
                           dtype=jnp.float32)
    o2 = jax.block_until_ready(downsample(x2, 3, 2, "reflect"))
    r2 = jax.block_until_ready(_reference_downsample(x2, 3, 2, "reflect", 0))
    assert o2.shape == (1, 2, 32, 32), o2.shape
    np.testing.assert_allclose(np.asarray(o2), np.asarray(r2),
                               rtol=1e-5, atol=1e-5)

    print("KERNEL_OK")
</pallas_src>

<mosaic_0001>
module attributes {stable_mosaic.version = 11 : i64} {
  func.func @_kron_kernel(%arg0: i32, %arg1: memref<256x64xf32, #tpu.memory_space<vmem>>, %arg2: memref<8x256xf32, #tpu.memory_space<vmem>>, %arg3: memref<8x64xf32, #tpu.memory_space<vmem>>) attributes {dimension_semantics = [#tpu.dimension_semantics<parallel>], iteration_bounds = array<i64: 1>, scalar_prefetch = 0 : i64, scratch_operands = 0 : i64, tpu.core_type = #tpu.core_type<tc>, window_params = [{pipeline_mode = #tpu.pipeline_mode<synchronous>, transform_indices = @transform_0, window_bounds = array<i64: 256, 64>}, {transform_indices = @transform_1, window_bounds = array<i64: 8, 256>}, {transform_indices = @transform_2, window_bounds = array<i64: 8, 64>}]} {
    %c0 = arith.constant 0 : index
    %c0_0 = arith.constant 0 : index
    %0 = vector.load %arg2[%c0, %c0_0] : memref<8x256xf32, #tpu.memory_space<vmem>>, vector<8x256xf32>
    %c0_1 = arith.constant 0 : index
    %c0_2 = arith.constant 0 : index
    %1 = vector.load %arg1[%c0_1, %c0_2] : memref<256x64xf32, #tpu.memory_space<vmem>>, vector<256x64xf32>
    %cst = arith.constant dense<0.000000e+00> : vector<8x64xf32>
    %2 = tpu.matmul %0, %1, %cst {dimension_numbers = #tpu.dot_dimension_numbers<[1], [0], [0], [1], [0, 0, 1, 1], [], []>} : vector<8x256xf32>, vector<256x64xf32>, vector<8x64xf32> -> vector<8x64xf32>
    %c0_3 = arith.constant 0 : index
    %c0_4 = arith.constant 0 : index
    %3 = vector.load %arg3[%c0_3, %c0_4] : memref<8x64xf32, #tpu.memory_space<vmem>>, vector<8x64xf32>
    tpu.vector_store %arg3[%c0_3, %c0_4], %2 {strides = array<i32>} : memref<8x64xf32, #tpu.memory_space<vmem>>, vector<8x64xf32>,
    return
  }
  func.func @transform_0(%arg0: i32) -> (i32, i32) {
    %c0_i32 = arith.constant 0 : i32
    %c0_i32_0 = arith.constant 0 : i32
    %c0_i32_1 = arith.constant 0 : i32
    return %c0_i32, %c0_i32_0 : i32, i32
  }
  func.func @transform_1(%arg0: i32) -> (i32, i32) {
    %c0_i32 = arith.constant 0 : i32
    %c0_i32_0 = arith.constant 0 : i32
    return %arg0, %c0_i32 : i32, i32
  }
  func.func @transform_2(%arg0: i32) -> (i32, i32) {
    %c0_i32 = arith.constant 0 : i32
    %c0_i32_0 = arith.constant 0 : i32
    return %arg0, %c0_i32 : i32, i32
  }
}

</mosaic_0001>

<bundles_post_ra>
// kernel: tpu_custom_call.1
= control target key start
LH: loop header
LB: loop body
LE: loop exit
PB: predicated region body
PF: predicated region fallthrough
CT: control target
= control target key end

     0   :  { %7 = vsyncpa [#allocation3], 0  ;;  %s360_s0 = inlined_call_operand.hbm [shape: f32[256,64], index: 0, kind: input, shape index: {}]   ;;  %s361_s1 = inlined_call_operand.hbm [shape: f32[8,256], index: 1, kind: input, shape index: {}]   ;;  %s362_s2 = inlined_call_operand.hbm [shape: f32[8,64], index: 2, kind: output, shape index: {}]  }
   0x1   :  { %8 = vsyncpa [#allocation6], 0 }
   0x2   :  { %9 = vsyncpa [#allocation4], 0  ;;  %s304_s9 = smov [#allocation2]   ;;  %s232_s13 = scalar_lea.hbm %s360_s0, 4096 }
   0x3   :  { %s15_s10 = sshll.u32 %s304_s9, 4  ;;  %p233_p0 = scmp.ne.s32.totalorder %s360_s0, %s232_s13  ;;  %s16_s10 = int_to_ptr.vmem [resolvable:$true] %s15_s10 }
   0x4   :  { %p236_p1 = scmp.lt.u32.totalorder %s232_s13, %s360_s0 }
   0x6   :  { %p238_p2 = pnand %p236_p1, %p233_p0 }
   0x8   :  { %241 = shalt.err (!%p238_p2)
}
   0x9   :  { %s242_s18 = scalar_lea.vmem %s16_s10, 4096  ;;  %p247_p4 = scmp.lt.s32.totalorder %s16_s10, %s16_s10 }
   0xa   :  { %p243_p3 = scmp.ne.s32.totalorder %s16_s10, %s242_s18  ;;  %p248_p5 = scmp.lt.s32.totalorder %s242_s18, %s242_s18 }
   0xc   :  { %p249_p6 = por %p248_p5, %p247_p4 }
   0xe   :  { %p250_p7 = pnand %p249_p6, %p243_p3 }
  0x10   :  { %253 = shalt.err (!%p250_p7)
}
  0x11   :  { %s305_s19 = smov 128   ;;  %s306_s20 = smov 8  }
  0x12   :  { %21 = dma.hbm_to_vmem [thread:$0]  %s360_s0, 4096, %s16_s10, [#allocation3], %s305_s19, %s305_s19, %s306_s20  }
  0x13   :  { %s307_s23 = smov [#allocation5]   ;;  %s254_s27 = scalar_lea.hbm %s361_s1, 256 }
  0x14   :  { %s28_s24 = sshll.u32 %s307_s23, 4  ;;  %p255_p8 = scmp.ne.s32.totalorder %s361_s1, %s254_s27  ;;  %s29_s24 = int_to_ptr.vmem [resolvable:$true] %s28_s24 }
  0x15   :  { %p258_p9 = scmp.lt.u32.totalorder %s254_s27, %s361_s1 }
  0x17   :  { %p260_p10 = pnand %p258_p9, %p255_p8 }
  0x19   :  { %263 = shalt.err (!%p260_p10)
}
  0x1a   :  { %s264_s4 = scalar_lea.vmem %s29_s24, 256  ;;  %p269_p12 = scmp.lt.s32.totalorder %s29_s24, %s29_s24 }
  0x1b   :  { %p265_p11 = scmp.ne.s32.totalorder %s29_s24, %s264_s4  ;;  %p270_p13 = scmp.lt.s32.totalorder %s264_s4, %s264_s4 }
  0x1d   :  { %p271_p0 = por %p270_p13, %p269_p12 }
  0x1f   :  { %p272_p1 = pnand %p271_p0, %p265_p11 }
  0x21   :  { %275 = shalt.err (!%p272_p1)
}
  0x22   :  { %31 = dma.hbm_to_vmem [thread:$0]  %s361_s1, 256, %s29_s24, [#allocation6]  }
  0x23   :  { %298 = dma.done.wait [#allocation3], 4096  }
  0x24   :  { %299 = vsyncadd [#allocation3], 4294963200 }
  0x25   :  { %300 = dma.done.wait [#allocation6], 256  }
  0x26   :  { %301 = vsyncadd [#allocation6], 4294967040  ;;  %v56_v0 = vld [vmem:[#allocation2 + $0x80] sm:$0xff]  ;;  %v57_v1 = vld [vmem:[#allocation2 + $0x88] sm:$0xff]  ;;  %s308_s1 = smov [#allocation7]   ;;  %vm142_vm0 = vcmask 523264  }
  0x27   :  { %v40_v2 = vld [vmem:[#allocation2] sm:$0xff]  ;;  %v195_v3 = vpack.c.bf16 %v57_v1, %v56_v0  ;;  %v41_v4 = vld [vmem:[#allocation2 + $0x8] sm:$0xff]  ;;  %v58_v5 = vld [vmem:[#allocation2 + $0x90] sm:$0xff]  ;;  %s150_s6 = sshll.u32 %s308_s1, 4  ;;  %s151_s6 = int_to_ptr.vmem [resolvable:$true] %s150_s6 }
  0x28   :  { %v59_v6 = vld [vmem:[#allocation2 + $0x98] sm:$0xff]  ;;  %v197_v7 = vpack.c.bf16 %v41_v4, %v40_v2  ;;  %v42_v9 = vld [vmem:[#allocation2 + $0x10] sm:$0xff]  ;;  %v60_v11 = vld [vmem:[#allocation2 + $0xa0] sm:$0xff]  ;;  %s276_s7 = scalar_lea.vmem %s151_s6, 128  ;;  %p281_p3 = scmp.lt.s32.totalorder %s151_s6, %s151_s6 }
  0x29   :  { %v199_v8 = vpack.c.bf16 %v59_v6, %v58_v5  ;;  %v43_v10 = vld [vmem:[#allocation2 + $0x18] sm:$0xff]  ;;  %196 = vmatprep.subr.bf16.mxu0 %v195_v3  ;;  %v61_v12 = vld [vmem:[#allocation2 + $0xa8] sm:$0xff]  ;;  %v44_v15 = vld [vmem:[#allocation2 + $0x20] sm:$0xff]  ;;  %p277_p2 = scmp.ne.s32.totalorder %s151_s6, %s276_s7  ;;  %p282_p4 = scmp.lt.s32.totalorder %s276_s7, %s276_s7 }
  0x2a   :  { %198 = vmatpush3.bf16.msra.mxu0 %v197_v7  ;;  %v201_v13 = vpack.c.bf16 %v43_v10, %v42_v9  ;;  %v203_v14 = vpack.c.bf16 %v61_v12, %v60_v11  ;;  %v45_v16 = vld [vmem:[#allocation2 + $0x28] sm:$0xff]  ;;  %v62_v17 = vld [vmem:[#allocation2 + $0xb0] sm:$0xff]  ;;  %v63_v18 = vld [vmem:[#allocation2 + $0xb8] sm:$0xff] }
  0x2b   :  { %200 = vmatprep.subr.bf16.mxu0 %v199_v8  ;;  %v205_v19 = vpack.c.bf16 %v45_v16, %v44_v15  ;;  %v207_v20 = vpack.c.bf16 %v63_v18, %v62_v17  ;;  %v46_v21 = vld [vmem:[#allocation2 + $0x30] sm:$0xff]  ;;  %v47_v22 = vld [vmem:[#allocation2 + $0x38] sm:$0xff]  ;;  %v64_v23 = vld [vmem:[#allocation2 + $0xc0] sm:$0xff]  ;;  %p283_p5 = por %p282_p4, %p281_p3 }
  0x2c   :  { %v65_v24 = vld [vmem:[#allocation2 + $0xc8] sm:$0xff]  ;;  %v209_v26 = vpack.c.bf16 %v47_v22, %v46_v21  ;;  %v48_v28 = vld [vmem:[#allocation2 + $0x40] sm:$0xff]  ;;  %v66_v30 = vld [vmem:[#allocation2 + $0xd0] sm:$0xff] }
  0x2d   :  { %v39_v25 = vld [vmem:[#allocation5 + $0x8] sm:$0xff]  ;;  %v211_v27 = vpack.c.bf16 %v65_v24, %v64_v23  ;;  %v67_v31 = vld [vmem:[#allocation2 + $0xd8] sm:$0xff]  ;;  %v50_v34 = vld [vmem:[#allocation2 + $0x50] sm:$0xff]  ;;  %p284_p6 = pnand %p283_p5, %p277_p2 }
  0x2e   :  { %202 = vmatpush3.bf16.msra.mxu0 %v201_v13  ;;  %136 = vmatprep.mubr.f32.mxu0 %v39_v25  ;;  %v49_v29 = vld [vmem:[#allocation2 + $0x48] sm:$0xff]  ;;  %v215_v33 = vpack.c.bf16 %v67_v31, %v66_v30  ;;  %v51_v35 = vld [vmem:[#allocation2 + $0x58] sm:$0xff]  ;;  %v68_v36 = vld [vmem:[#allocation2 + $0xe0] sm:$0xff] }
  0x2f   :  { %204 = vmatprep.subr.bf16.mxu0 %v203_v14  ;;  %v213_v32 = vpack.c.bf16 %v49_v29, %v48_v28  ;;  %v69_v37 = vld [vmem:[#allocation2 + $0xe8] sm:$0xff]  ;;  %v217_v38 = vpack.c.bf16 %v51_v35, %v50_v34  ;;  %v52_v40 = vld [vmem:[#allocation2 + $0x60] sm:$0xff]  ;;  %v70_v42 = vld [vmem:[#allocation2 + $0xf0] sm:$0xff] }
  0x30   :  { %v219_v39 = vpack.c.bf16 %v69_v37, %v68_v36  ;;  %v53_v41 = vld [vmem:[#allocation2 + $0x68] sm:$0xff]  ;;  %v71_v43 = vld [vmem:[#allocation2 + $0xf8] sm:$0xff]  ;;  %v54_v46 = vld [vmem:[#allocation2 + $0x70] sm:$0xff] }
  0x31   :  { %v221_v44 = vpack.c.bf16 %v53_v41, %v52_v40  ;;  %v223_v45 = vpack.c.bf16 %v71_v43, %v70_v42  ;;  %v55_v47 = vld [vmem:[#allocation2 + $0x78] sm:$0xff]  ;;  %v38_v49 = vld [vmem:[#allocation5] sm:$0xff] }
  0x32   :  { %206 = vmatpush3.bf16.msra.mxu0 %v205_v19  ;;  %v225_v48 = vpack.c.bf16 %v55_v47, %v54_v46 }
  0x33   :  { %208 = vmatprep.subr.bf16.mxu0 %v207_v20 }
  0x36   :  { %210 = vmatpush3.bf16.msra.mxu0 %v209_v26 }
  0x37   :  { %212 = vmatprep.subr.bf16.mxu0 %v211_v27 }
  0x3a   :  { %214 = vmatpush3.bf16.msra.mxu0 %v213_v32 }
  0x3b   :  { %216 = vmatprep.subr.bf16.mxu0 %v215_v33 }
  0x3e   :  { %218 = vmatpush3.bf16.msra.mxu0 %v217_v38 }
  0x3f   :  { %220 = vmatprep.subr.bf16.mxu0 %v219_v39 }
  0x42   :  { %222 = vmatpush3.bf16.msra.mxu0 %v221_v44 }
  0x43   :  { %224 = vmatprep.subr.bf16.mxu0 %v223_v45 }
  0x46   :  { %226 = vmatpush3.bf16.msra.mxu0 %v225_v48 }
  0x49   :  { %137 = vmatmul.mubr.f32.vlgmr.msra.gmra.mrb[0].mxu0 %v38_v49 }
 0x11c   :  { %v192_v50 = vpop.f32.mrb[0].mxu0 }
 0x11d   :  { %v193_v51 = vpop.f32.mrb[1].mxu0 }
 0x11e   :  { %v194_v52 = vadd.f32 %v193_v51, %v192_v50 }
 0x120   :  { %143 = vst.msk [vmem:[#allocation7] sm:$0xff] %vm142_vm0, %v194_v52 }
 0x121   :  { %287 = shalt.err (!%p284_p6)
}
 0x122   :  { %s288_s10 = scalar_lea.hbm %s362_s2, 128 }
 0x123   :  { %p289_p7 = scmp.ne.s32.totalorder %s362_s2, %s288_s10  ;;  %p292_p8 = scmp.lt.u32.totalorder %s288_s10, %s362_s2 }
 0x125   :  { %p294_p9 = pnand %p292_p8, %p289_p7 }
 0x127   :  { %297 = shalt.err (!%p294_p9)
}
 0x128   :  { %153 = dma.vmem_to_hbm [thread:$0]  %s151_s6, 128, %s362_s2, [#allocation4]  }
 0x129   :  { %302 = dma.done.wait [#allocation4], 128  }
 0x12a   :  { %303 = vsyncadd [#allocation4], 4294967168 }
 0x12b   :  { %157 = vsyncpa [#allocation3], 1 }
 0x12c   :  { %158 = vsyncpa [#allocation6], 1 }
 0x12d   :  { %159 = vsyncpa [#allocation4], 1 }

</bundles_post_ra>
